<compile_context>
chip_gen: v5e
topology: v5e:2x2
jax: 0.10.0
libtpu: 0.0.40
codegen_flags: <defaults>
</compile_context>

<pallas_src>
import numpy as np
import jax
import jax.numpy as jnp
from jax.experimental import pallas as pl
from jax.experimental.pallas import tpu as pltpu


def _round_up(a, m):
    return (a + m - 1) // m * m


def _nearest_exact_indices(in_size, out_size):
    # torch 'nearest-exact': src = min(floor((dst + 0.5) * in/out), in - 1)
    i = np.arange(out_size)
    return np.minimum(np.floor((i + 0.5) * in_size / out_size), in_size - 1).astype(np.int64)


def _make_residual_kernel(cin, cout, wh, lq):
    """Fused conv + Re-Zero residual kernel; one image per grid step."""
    shifts = ((0, 0), (0, 1), (1, 0), (1, 1))   # (dh, dw) of the 2x2 post-parity conv
    res_off = wh + 1                            # flat offset of the (dh=1, dw=1) center tap

    def kernel(x_ref, w_ref, wr_ref, ab_ref, o_ref):
        # x_ref : (1, 4*Cin, Lp)   f32  parity space-to-batch image, flattened with pitch Wh
        # w_ref : (4, Cout, 4*Cin) bf16 alpha-folded conv weights, grouped by (dh, dw) shift
        # wr_ref: (Cout, Cin)      f32  nearest-exact channel one-hot (residual select)
        # ab_ref: (Cout, 1)        f32  alpha * bias
        # o_ref : (1, Cout, Lq)    f32  conv + residual, flattened with pitch Wh
        acc = jnp.zeros((cout, lq), jnp.float32)
        for s, (dh, dw) in enumerate(shifts):
            off = dh * wh + dw
            tap = x_ref[0, :, off:off + lq].astype(jnp.bfloat16)        # (4*Cin, Lq) bf16
            acc = acc + jnp.dot(w_ref[s], tap, preferred_element_type=jnp.float32)
        # Nearest-exact resized residual == (kh=2, kw=2) tap of parity plane (ph=0, pw=0),
        # channel-gathered with exact f32 one-hot multiply-adds on the VPU (no rounding).
        xc = x_ref[0, 0:cin, res_off:res_off + lq]                      # (Cin, Lq) f32
        resid = jnp.zeros((cout, lq), jnp.float32)
        for ci in range(cin):
            resid = resid + wr_ref[:, ci:ci + 1] * xc[ci:ci + 1, :]
        o_ref[0] = acc + resid + ab_ref[...]

    return kernel


@jax.jit
def residual_conv_forward(x_nchw, w, b, alpha):
    """alpha * conv2d(x, w, b; stride=2, pad=1) + nearest_exact_resize(x, out.shape[1:])."""
    N, Cin, H, W = x_nchw.shape
    Cout, Cin_w, KH, KW = w.shape
    pad = 1
    # TODO(synk): general stride/pad/kernel-size fallback not implemented; this kernel is
    # specialized to the Conv2d(k=3, stride=2, pad=1), even-H/W instance wrapped by Residual.
    assert Cin_w == Cin and (KH, KW) == (3, 3) and H % 2 == 0 and W % 2 == 0

    Ho, Wo = H // 2, W // 2
    Hh, Wh = Ho + 1, Wo + 1                  # parity-plane extent (covers shifts dh/dw in {0,1})
    L = Hh * Wh                              # flattened spatial length (row pitch = Wh)
    Lq = _round_up(L, 128)                   # lane-dense output width per image
    Lp = Lq + _round_up(Wh + 1, 128)         # input width incl. the max (dh, dw) shift halo

    # ---- parity space-to-batch (x-sized, NOT a 9x im2col): x_sb[ph,pw,c,i,j] = x_pad[c,2i+ph,2j+pw]
    Hp, Wp = 2 * Hh, 2 * Wh
    x_p = jnp.pad(x_nchw.astype(jnp.float32),
                  ((0, 0), (0, 0), (pad, Hp - H - pad), (pad, Wp - W - pad)))
    x_sb = x_p.reshape(N, Cin, Hh, 2, Wh, 2)
    x_sb = jnp.transpose(x_sb, (0, 3, 5, 1, 2, 4))          # (N, 2, 2, Cin, Hh, Wh)
    x_flat = x_sb.reshape(N, 4 * Cin, L)
    x_flat = jnp.pad(x_flat, ((0, 0), (0, 0), (0, Lp - L)))  # zero halo; garbage lanes discarded

    # ---- weights: fold alpha in f32, then cast bf16; group the 9 taps by (dh, dw) shift ----
    alpha_f = jnp.asarray(alpha, jnp.float32)
    w_f = w.astype(jnp.float32)
    w_shift = jnp.zeros((4, Cout, 4 * Cin), jnp.float32)
    for kh in range(KH):
        for kw in range(KW):
            ph, dh = kh % 2, kh // 2
            pw, dw = kw % 2, kw // 2
            s = dh * 2 + dw
            c0 = (ph * 2 + pw) * Cin
            w_shift = w_shift.at[s, :, c0:c0 + Cin].set(w_f[:, :, kh, kw])
    w_shift = (alpha_f * w_shift).astype(jnp.bfloat16)
    # TODO(synk): on v7x an fp8 (e4m3) cast of w_shift/taps would halve the matmul stream again.

    ci_map = _nearest_exact_indices(Cin, Cout)                       # nearest-exact channel map
    wr = jnp.asarray(np.eye(Cin, dtype=np.float32)[ci_map])          # (Cout, Cin) one-hot
    ab = (alpha_f * b.astype(jnp.float32)).reshape(Cout, 1)          # alpha * bias

    kernel = _make_residual_kernel(Cin, Cout, Wh, Lq)
    out_flat = pl.pallas_call(
        kernel,
        out_shape=jax.ShapeDtypeStruct((N, Cout, Lq), jnp.float32),
        grid=(N,),
        in_specs=[
            pl.BlockSpec((1, 4 * Cin, Lp), lambda n: (n, 0, 0)),     # per-image input stream
            pl.BlockSpec((4, Cout, 4 * Cin), lambda n: (0, 0, 0)),   # VMEM-resident weights
            pl.BlockSpec((Cout, Cin), lambda n: (0, 0)),             # residual one-hot
            pl.BlockSpec((Cout, 1), lambda n: (0, 0)),               # alpha * bias
        ],
        out_specs=pl.BlockSpec((1, Cout, Lq), lambda n: (n, 0, 0)),
        compiler_params=pltpu.CompilerParams(
            dimension_semantics=("parallel",),   # batch steps shard across v7x's two TensorCores
            vmem_limit_bytes=32 * 1024 * 1024,
        ),
    )(x_flat, w_shift, wr, ab)
    # TODO(synk): add an inner lane-tile grid axis (cap ~2048 lanes/step) for very large images;
    # at these shapes one image per step is already >= 128 lanes and fits VMEM with large margin.

    # (N, Cout, Lq) with row pitch Wh -> NCHW (extra parity row/col + lane padding discarded)
    return out_flat[:, :, :L].reshape(N, Cout, Hh, Wh)[:, :, :Ho, :Wo]


def _reference(x_nchw, w, b, alpha, stride=2, pad=1):
    conv = jax.lax.conv_general_dilated(
        x_nchw.astype(jnp.float32), w.astype(jnp.float32),
        window_strides=(stride, stride), padding=((pad, pad), (pad, pad)),
        dimension_numbers=("NCHW", "OIHW", "NCHW"),
        precision=jax.lax.Precision.HIGHEST,
    ) + b.astype(jnp.float32).reshape(1, -1, 1, 1)
    N, Cin, H, W = x_nchw.shape
    Cout, Ho, Wo = conv.shape[1], conv.shape[2], conv.shape[3]
    ci = jnp.asarray(_nearest_exact_indices(Cin, Cout))
    hi = jnp.asarray(_nearest_exact_indices(H, Ho))
    wi = jnp.asarray(_nearest_exact_indices(W, Wo))
    x_res = jnp.take(jnp.take(jnp.take(x_nchw, ci, axis=1), hi, axis=2), wi, axis=3)
    return alpha * conv + x_res.astype(jnp.float32)


if __name__ == "__main__":
    key = jax.random.PRNGKey(0)
    kx, kw_key, kb = jax.random.split(key, 3)

    N, Cin, H, W = 2, 4, 16, 16
    Cout, KH, KW = 8, 3, 3

    x = jax.random.normal(kx, (N, Cin, H, W), dtype=jnp.float32)
    w = jax.random.normal(kw_key, (Cout, Cin, KH, KW), dtype=jnp.float32) * 0.1
    b = jax.random.normal(kb, (Cout,), dtype=jnp.float32) * 0.1

    # Re-Zero init (alpha = 0): output must equal the nearest-exact resized input; the residual
    # path is pure f32 in the kernel, so this comparison is essentially exact.
    out0 = jax.block_until_ready(residual_conv_forward(x, w, b, 0.0))
    ref0 = _reference(x, w, b, 0.0)
    np.testing.assert_allclose(np.asarray(out0), np.asarray(ref0), rtol=1e-6, atol=1e-6)

    # Non-zero alpha exercises the bf16 MXU conv path (f32 accumulate + f32 epilogue);
    # compare against the f32 reference at bf16-level tolerance.
    out1 = jax.block_until_ready(residual_conv_forward(x, w, b, 0.5))
    ref1 = _reference(x, w, b, 0.5)
    np.testing.assert_allclose(np.asarray(out1), np.asarray(ref1), rtol=2e-2, atol=2e-2)

    print("KERNEL_OK")
</pallas_src>

<mosaic_0001>
module attributes {stable_mosaic.version = 11 : i64} {
  func.func @kernel(%arg0: i32, %arg1: memref<1x16x256xf32, #tpu.memory_space<vmem>>, %arg2: memref<4x8x16xbf16, #tpu.memory_space<vmem>>, %arg3: memref<8x4xf32, #tpu.memory_space<vmem>>, %arg4: memref<8x1xf32, #tpu.memory_space<vmem>>, %arg5: memref<1x8x128xf32, #tpu.memory_space<vmem>>) attributes {dimension_semantics = [#tpu.dimension_semantics<parallel>], iteration_bounds = array<i64: 2>, scalar_prefetch = 0 : i64, scratch_operands = 0 : i64, tpu.core_type = #tpu.core_type<tc>, window_params = [{transform_indices = @transform_0, window_bounds = array<i64: 1, 16, 256>}, {pipeline_mode = #tpu.pipeline_mode<synchronous>, transform_indices = @transform_1, window_bounds = array<i64: 4, 8, 16>}, {pipeline_mode = #tpu.pipeline_mode<synchronous>, transform_indices = @transform_2, window_bounds = array<i64: 8, 4>}, {pipeline_mode = #tpu.pipeline_mode<synchronous>, transform_indices = @transform_3, window_bounds = array<i64: 8, 1>}, {transform_indices = @transform_4, window_bounds = array<i64: 1, 8, 128>}]} {
    %cst = arith.constant 0.000000e+00 : f32
    %0 = vector.broadcast %cst : f32 to vector<8x128xf32>
    %c0 = arith.constant 0 : index
    %c0_0 = arith.constant 0 : index
    %c0_1 = arith.constant 0 : index
    %1 = vector.load %arg1[%c0, %c0_0, %c0_1] : memref<1x16x256xf32, #tpu.memory_space<vmem>>, vector<1x16x128xf32>
    %2 = vector.shape_cast %1 : vector<1x16x128xf32> to vector<16x128xf32>
    %3 = arith.truncf %2 : vector<16x128xf32> to vector<16x128xbf16>
    %c0_2 = arith.constant 0 : index
    %c0_3 = arith.constant 0 : index
    %c0_4 = arith.constant 0 : index
    %4 = vector.load %arg2[%c0_2, %c0_3, %c0_4] : memref<4x8x16xbf16, #tpu.memory_space<vmem>>, vector<1x8x16xbf16>
    %5 = vector.shape_cast %4 : vector<1x8x16xbf16> to vector<8x16xbf16>
    %cst_5 = arith.constant dense<0.000000e+00> : vector<8x128xf32>
    %6 = tpu.matmul %5, %3, %cst_5 {dimension_numbers = #tpu.dot_dimension_numbers<[1], [0], [0], [1], [0, 0, 1, 1], [], []>} : vector<8x16xbf16>, vector<16x128xbf16>, vector<8x128xf32> -> vector<8x128xf32>
    %7 = arith.addf %0, %6 : vector<8x128xf32>
    %c0_6 = arith.constant 0 : index
    %c0_7 = arith.constant 0 : index
    %c1 = arith.constant 1 : index
    %8 = vector.load %arg1[%c0_6, %c0_7, %c1] : memref<1x16x256xf32, #tpu.memory_space<vmem>>, vector<1x16x128xf32>
    %9 = vector.shape_cast %8 : vector<1x16x128xf32> to vector<16x128xf32>
    %10 = arith.truncf %9 : vector<16x128xf32> to vector<16x128xbf16>
    %c1_8 = arith.constant 1 : index
    %c0_9 = arith.constant 0 : index
    %c0_10 = arith.constant 0 : index
    %11 = vector.load %arg2[%c1_8, %c0_9, %c0_10] : memref<4x8x16xbf16, #tpu.memory_space<vmem>>, vector<1x8x16xbf16>
    %12 = vector.shape_cast %11 : vector<1x8x16xbf16> to vector<8x16xbf16>
    %cst_11 = arith.constant dense<0.000000e+00> : vector<8x128xf32>
    %13 = tpu.matmul %12, %10, %cst_11 {dimension_numbers = #tpu.dot_dimension_numbers<[1], [0], [0], [1], [0, 0, 1, 1], [], []>} : vector<8x16xbf16>, vector<16x128xbf16>, vector<8x128xf32> -> vector<8x128xf32>
    %14 = arith.addf %7, %13 : vector<8x128xf32>
    %c0_12 = arith.constant 0 : index
    %c0_13 = arith.constant 0 : index
    %c9 = arith.constant 9 : index
    %15 = vector.load %arg1[%c0_12, %c0_13, %c9] : memref<1x16x256xf32, #tpu.memory_space<vmem>>, vector<1x16x128xf32>
    %16 = vector.shape_cast %15 : vector<1x16x128xf32> to vector<16x128xf32>
    %17 = arith.truncf %16 : vector<16x128xf32> to vector<16x128xbf16>
    %c2 = arith.constant 2 : index
    %c0_14 = arith.constant 0 : index
    %c0_15 = arith.constant 0 : index
    %18 = vector.load %arg2[%c2, %c0_14, %c0_15] : memref<4x8x16xbf16, #tpu.memory_space<vmem>>, vector<1x8x16xbf16>
    %19 = vector.shape_cast %18 : vector<1x8x16xbf16> to vector<8x16xbf16>
    %cst_16 = arith.constant dense<0.000000e+00> : vector<8x128xf32>
    %20 = tpu.matmul %19, %17, %cst_16 {dimension_numbers = #tpu.dot_dimension_numbers<[1], [0], [0], [1], [0, 0, 1, 1], [], []>} : vector<8x16xbf16>, vector<16x128xbf16>, vector<8x128xf32> -> vector<8x128xf32>
    %21 = arith.addf %14, %20 : vector<8x128xf32>
    %c0_17 = arith.constant 0 : index
    %c0_18 = arith.constant 0 : index
    %c10 = arith.constant 10 : index
    %22 = vector.load %arg1[%c0_17, %c0_18, %c10] : memref<1x16x256xf32, #tpu.memory_space<vmem>>, vector<1x16x128xf32>
    %23 = vector.shape_cast %22 : vector<1x16x128xf32> to vector<16x128xf32>
    %24 = arith.truncf %23 : vector<16x128xf32> to vector<16x128xbf16>
    %c3 = arith.constant 3 : index
    %c0_19 = arith.constant 0 : index
    %c0_20 = arith.constant 0 : index
    %25 = vector.load %arg2[%c3, %c0_19, %c0_20] : memref<4x8x16xbf16, #tpu.memory_space<vmem>>, vector<1x8x16xbf16>
    %26 = vector.shape_cast %25 : vector<1x8x16xbf16> to vector<8x16xbf16>
    %cst_21 = arith.constant dense<0.000000e+00> : vector<8x128xf32>
    %27 = tpu.matmul %26, %24, %cst_21 {dimension_numbers = #tpu.dot_dimension_numbers<[1], [0], [0], [1], [0, 0, 1, 1], [], []>} : vector<8x16xbf16>, vector<16x128xbf16>, vector<8x128xf32> -> vector<8x128xf32>
    %28 = arith.addf %21, %27 : vector<8x128xf32>
    %c0_22 = arith.constant 0 : index
    %c0_23 = arith.constant 0 : index
    %c10_24 = arith.constant 10 : index
    %29 = vector.load %arg1[%c0_22, %c0_23, %c10_24] : memref<1x16x256xf32, #tpu.memory_space<vmem>>, vector<1x4x128xf32>
    %30 = vector.shape_cast %29 : vector<1x4x128xf32> to vector<4x128xf32>
    %cst_25 = arith.constant 0.000000e+00 : f32
    %31 = vector.broadcast %cst_25 : f32 to vector<8x128xf32>
    %c0_26 = arith.constant 0 : index
    %c0_27 = arith.constant 0 : index
    %32 = vector.load %arg3[%c0_26, %c0_27] : memref<8x4xf32, #tpu.memory_space<vmem>>, vector<8x1xf32>
    %33 = vector.extract_strided_slice %30 {offsets = [0, 0], sizes = [1, 128], strides = [1, 1]} : vector<4x128xf32> to vector<1x128xf32>
    %34 = vector.broadcast %32 : vector<8x1xf32> to vector<8x128xf32>
    %35 = vector.broadcast %33 : vector<1x128xf32> to vector<8x128xf32>
    %36 = arith.mulf %34, %35 : vector<8x128xf32>
    %37 = arith.addf %31, %36 : vector<8x128xf32>
    %c0_28 = arith.constant 0 : index
    %c1_29 = arith.constant 1 : index
    %38 = vector.load %arg3[%c0_28, %c1_29] : memref<8x4xf32, #tpu.memory_space<vmem>>, vector<8x1xf32>
    %39 = vector.extract_strided_slice %30 {offsets = [1, 0], sizes = [1, 128], strides = [1, 1]} : vector<4x128xf32> to vector<1x128xf32>
    %40 = vector.broadcast %38 : vector<8x1xf32> to vector<8x128xf32>
    %41 = vector.broadcast %39 : vector<1x128xf32> to vector<8x128xf32>
    %42 = arith.mulf %40, %41 : vector<8x128xf32>
    %43 = arith.addf %37, %42 : vector<8x128xf32>
    %c0_30 = arith.constant 0 : index
    %c2_31 = arith.constant 2 : index
    %44 = vector.load %arg3[%c0_30, %c2_31] : memref<8x4xf32, #tpu.memory_space<vmem>>, vector<8x1xf32>
    %45 = vector.extract_strided_slice %30 {offsets = [2, 0], sizes = [1, 128], strides = [1, 1]} : vector<4x128xf32> to vector<1x128xf32>
    %46 = vector.broadcast %44 : vector<8x1xf32> to vector<8x128xf32>
    %47 = vector.broadcast %45 : vector<1x128xf32> to vector<8x128xf32>
    %48 = arith.mulf %46, %47 : vector<8x128xf32>
    %49 = arith.addf %43, %48 : vector<8x128xf32>
    %c0_32 = arith.constant 0 : index
    %c3_33 = arith.constant 3 : index
    %50 = vector.load %arg3[%c0_32, %c3_33] : memref<8x4xf32, #tpu.memory_space<vmem>>, vector<8x1xf32>
    %51 = vector.extract_strided_slice %30 {offsets = [3, 0], sizes = [1, 128], strides = [1, 1]} : vector<4x128xf32> to vector<1x128xf32>
    %52 = vector.broadcast %50 : vector<8x1xf32> to vector<8x128xf32>
    %53 = vector.broadcast %51 : vector<1x128xf32> to vector<8x128xf32>
    %54 = arith.mulf %52, %53 : vector<8x128xf32>
    %55 = arith.addf %49, %54 : vector<8x128xf32>
    %56 = arith.addf %28, %55 : vector<8x128xf32>
    %c0_34 = arith.constant 0 : index
    %c0_35 = arith.constant 0 : index
    %57 = vector.load %arg4[%c0_34, %c0_35] : memref<8x1xf32, #tpu.memory_space<vmem>>, vector<8x1xf32>
    %58 = vector.broadcast %57 : vector<8x1xf32> to vector<8x128xf32>
    %59 = arith.addf %56, %58 : vector<8x128xf32>
    %c0_36 = arith.constant 0 : index
    %c0_37 = arith.constant 0 : index
    %c0_38 = arith.constant 0 : index
    %60 = vector.load %arg5[%c0_36, %c0_37, %c0_38] : memref<1x8x128xf32, #tpu.memory_space<vmem>>, vector<1x8x128xf32>
    %61 = vector.shape_cast %60 : vector<1x8x128xf32> to vector<8x128xf32>
    %62 = vector.shape_cast %59 : vector<8x128xf32> to vector<1x8x128xf32>
    tpu.vector_store %arg5[%c0_36, %c0_37, %c0_38], %62 {strides = array<i32>} : memref<1x8x128xf32, #tpu.memory_space<vmem>>, vector<1x8x128xf32>,
    return
  }
  func.func @transform_0(%arg0: i32) -> (i32, i32, i32) {
    %c0_i32 = arith.constant 0 : i32
    %c0_i32_0 = arith.constant 0 : i32
    %c0_i32_1 = arith.constant 0 : i32
    return %arg0, %c0_i32, %c0_i32_0 : i32, i32, i32
  }
  func.func @transform_1(%arg0: i32) -> (i32, i32, i32) {
    %c0_i32 = arith.constant 0 : i32
    %c0_i32_0 = arith.constant 0 : i32
    %c0_i32_1 = arith.constant 0 : i32
    %c0_i32_2 = arith.constant 0 : i32
    return %c0_i32, %c0_i32_0, %c0_i32_1 : i32, i32, i32
  }
  func.func @transform_2(%arg0: i32) -> (i32, i32) {
    %c0_i32 = arith.constant 0 : i32
    %c0_i32_0 = arith.constant 0 : i32
    %c0_i32_1 = arith.constant 0 : i32
    return %c0_i32, %c0_i32_0 : i32, i32
  }
  func.func @transform_3(%arg0: i32) -> (i32, i32) {
    %c0_i32 = arith.constant 0 : i32
    %c0_i32_0 = arith.constant 0 : i32
    %c0_i32_1 = arith.constant 0 : i32
    return %c0_i32, %c0_i32_0 : i32, i32
  }
  func.func @transform_4(%arg0: i32) -> (i32, i32, i32) {
    %c0_i32 = arith.constant 0 : i32
    %c0_i32_0 = arith.constant 0 : i32
    %c0_i32_1 = arith.constant 0 : i32
    return %arg0, %c0_i32, %c0_i32_0 : i32, i32, i32
  }
}

</mosaic_0001>

<bundles_post_ra>
// kernel: residual_conv_forward.1
= control target key start
LH: loop header
LB: loop body
LE: loop exit
PB: predicated region body
PF: predicated region fallthrough
CT: control target
= control target key end

     0   :  { %s496_s15 = smov 0   ;;  %s553_s0 = inlined_call_operand.vmem [shape: f32[2,16,256], index: 0, kind: input, shape index: {}]   ;;  %s554_s1 = inlined_call_operand.vmem [shape: bf16[4,8,16], index: 1, kind: input, shape index: {}]   ;;  %s555_s2 = inlined_call_operand.vmem [shape: f32[8,4], index: 2, kind: input, shape index: {}]   ;;  %s556_s3 = inlined_call_operand.vmem [shape: f32[8,1], index: 3, kind: input, shape index: {}]   ;;  %s557_s4 = inlined_call_operand.vmem [shape: f32[2,8,128], index: 4, kind: output, shape index: {}]  }
   0x1 LB: > { %s418_s16 = sadd.s32 4294967295, %s462_s15   ;;  %p422_p0 = scmp.ge.s32.totalorder %s462_s15, 1  ;;  %s462_s15 = sphi %s496_s15, %s14_s15  }
   0x2   : > { %p162_p1 = scmp.lt.s32.totalorder %s462_s15, 3 }
   0x4   : > { %p163_p2 = pnand %p422_p0, %p162_p1 }
   0x5   : > { %p187_p3 = scmp.lt.s32.totalorder (!%p163_p2), %s418_s16, 1  ;;  %s467_s21 = smov (!%p163_p2), 118  }
   0x6   : > { %166 = sbr.rel (%p163_p2) target bundleno = 285 (0x11d), region = 36  ;;  %s468_s22 = smov (!%p163_p2), 119  }
   0x7   : > { %s469_s23 = smov (!%p163_p2), 127  }
   0xb   : > { %v464_v0 = vmov 1   ;;  %v465_v1 = vmov 0   ;;  %s559_s16 = smov (!%p187_p3, %s418_s16), 1  ;;  %v466_v2 = vmov 2   ;;  %v305_v9 = vld [vmem:[%s555_s2] sm:$0xff]  ;;  %v470_v10 = vmov 3  }
   0xc   : > { %452 = vset.pattern.permute.xlu1 %v464_v0  ;;  %451 = vset.pattern.permute.xlu0 %v465_v1  ;;  %s435_s17 = sshll.u32 %s559_s16, 5  ;;  %vm218_vm0 = vcmask 130048   ;;  %v200_v11 = vld [vmem:[%s554_s1] sm:$0xf]  ;;  %vm215_vm1 = vcmask 1039360   ;;  %vm257_vm2 = vcmask 973824  }
   0xd   : > { %453 = vset.pattern.permute.xlu2 %v466_v2  ;;  %s510_s20 = scalar_lea.vmem %s553_s0, %s435_s17  ;;  %v426_v15 = vld [vmem:[%s554_s1 + $0x4] sm:$0xf]  ;;  %vm283_vm3 = vcmask 965632   ;;  %v429_v23 = vld [vmem:[%s554_s1 + $0x8] sm:$0xf]  ;;  %s425_s10 = sshll.u32 %s559_s16, 3 }
   0xe   : > { %v201_v3 = vld [vmem:[%s510_s20] sm:$0xff]  ;;  %v203_v4 = vld [vmem:[%s510_s20 + $0x10] sm:$0xff]  ;;  %v202_v6 = vld [vmem:[%s510_s20 + $0x8] sm:$0xff]  ;;  %s195_s13 = scalar_lea.vmem %s557_s4, %s425_s10 }
   0xf   : > { %v205_v5 = vpack.c.bf16 %v203_v4, %v201_v3  ;;  %v204_v7 = vld [vmem:[%s510_s20 + $0x18] sm:$0xff]  ;;  %v357_v16 = vld [vmem:[%s556_s3] sm:$0xff]  ;;  %v431_v24 = vld [vmem:[%s554_s1 + $0xc] sm:$0xf] }
  0x10   : > { %v206_v8 = vpack.c.bf16 %v204_v7, %v202_v6  ;;  %v303_v25 = vld [vmem:[%s510_s20] sm:$0xf]  ;;  %v304_v26 = vld [vmem:[%s510_s20 + $0x8] sm:$0xf] }
  0x11   : > { %279 = vrot.lane.b32.xlu1 %v205_v5, %s467_s21  ;;  %253 = vrot.lane.b32.xlu0 %v205_v5, %s468_s22  ;;  %v321_v27 = vperm.slane %v303_v25, 1  ;;  %v322_v28 = vperm.slane %v304_v26, 1  ;;  %v311_v29 = vperm.slane %v303_v25, 0  ;;  %v312_v30 = vperm.slane %v304_v26, 0 }
  0x12   : > { %211 = vrot.lane.b32.xlu2 %v205_v5, %s469_s23  ;;  %245 = vmatpush.bf16.msra.mxu1 %v205_v5  ;;  %v331_v33 = vperm.slane %v303_v25, 2  ;;  %v332_v34 = vperm.slane %v304_v26, 2  ;;  %v341_v40 = vperm.slane %v303_v25, 3  ;;  %v342_v41 = vperm.slane %v304_v26, 3 }
  0x15   : > { %428 = vmatmul.msk.bf16.vlgmr.msra.gmra.mxu1 %vm218_vm0, %v200_v11 }
  0x19   : > { %281 = vrot.lane.b32.xlu1 %v206_v8, %s467_s21  ;;  %255 = vrot.lane.b32.xlu0 %v206_v8, %s468_s22 }
  0x1a   : > { %213 = vrot.lane.b32.xlu2 %v206_v8, %s469_s23 }
  0x21   : > { %318 = vperm.xlu1 %452, %v305_v9   ;;  %308 = vperm.xlu0 %451, %v305_v9  }
  0x22   : > { %328 = vperm.xlu2 %453, %v305_v9  }
  0x29   : > { %454 = vset.pattern.permute.xlu1 %v470_v10 }
  0x2a   : > { %338 = vperm.xlu1 %454, %v305_v9  }
  0x32   : > { %455 = vset.pattern.permute.xlu1 %v465_v1 }
  0x33   : > { %360 = vperm.xlu1 %455, %v357_v16  }
  0x6c   : > { %v212_v12 = vpop.permute.xlu2 %211 }
  0x74   : > { %v214_v13 = vpop.permute.xlu2 %213 }
  0x75   : > { %v216_v14 = vsel %vm215_vm1, %v212_v12, %v214_v13 }
  0x76   : > { %229 = vmatpush.bf16.msra.mxu0 %v216_v14 }
  0x79   : > { %427 = vmatmul.msk.bf16.vlgmr.msra.gmra.mxu0 %vm218_vm0, %v426_v15 }
  0x7c   : > { %v329_v39 = vpop.permute.xlu2 %328 }
  0x7d   : > { %v333_v44 = vmul.f32 %v331_v33, %v329_v39  ;;  %v334_v45 = vmul.f32 %v332_v34, %v329_v39 }
  0x83   : > { %v280_v17 = vpop.permute.xlu1 %279  ;;  %v254_v18 = vpop.permute.xlu0 %253 }
  0x8b   : > { %v282_v19 = vpop.permute.xlu1 %281  ;;  %v256_v20 = vpop.permute.xlu0 %255 }
  0x8c   : > { %v258_v21 = vsel %vm257_vm2, %v254_v18, %v256_v20  ;;  %v284_v22 = vsel %vm283_vm3, %v280_v17, %v282_v19 }
  0x8d   : > { %270 = vmatpush.bf16.msra.mxu2 %v258_v21  ;;  %296 = vmatpush.bf16.msra.mxu3 %v284_v22 }
  0x90   : > { %430 = vmatmul.msk.bf16.vlgmr.msra.gmra.mxu2 %vm218_vm0, %v429_v23  ;;  %432 = vmatmul.msk.bf16.vlgmr.msra.gmra.mxu3 %vm218_vm0, %v431_v24 }
  0x92   : > { %v247_v53 = vpop.f32.mrf.mxu1 }
  0x93   : > { %v319_v31 = vpop.permute.xlu1 %318  ;;  %v309_v32 = vpop.permute.xlu0 %308 }
  0x94   : > { %v323_v35 = vmul.f32 %v321_v27, %v319_v31  ;;  %v324_v36 = vmul.f32 %v322_v28, %v319_v31  ;;  %v313_v37 = vmul.f32 %v311_v29, %v309_v32  ;;  %v314_v38 = vmul.f32 %v312_v30, %v309_v32 }
  0x96   : > { %v325_v42 = vadd.f32 %v323_v35, %v313_v37  ;;  %v326_v43 = vadd.f32 %v324_v36, %v314_v38 }
  0x98   : > { %v335_v47 = vadd.f32 %v333_v44, %v325_v42  ;;  %v336_v48 = vadd.f32 %v334_v45, %v326_v43 }
  0x9a   : > { %v249_v54 = vpop.f32.mrf.mxu1 }
  0x9c   : > { %v339_v46 = vpop.permute.xlu1 %338 }
  0x9d   : > { %v343_v49 = vmul.f32 %v341_v40, %v339_v46  ;;  %v344_v50 = vmul.f32 %v342_v41, %v339_v46 }
  0x9f   : > { %v345_v51 = vadd.f32 %v343_v49, %v335_v47  ;;  %v346_v52 = vadd.f32 %v344_v50, %v336_v48 }
  0xa1   : > { %351 = vrot.lane.b32.xlu0 %v346_v52, %s467_s21  ;;  %349 = vrot.lane.b32.xlu2 %v345_v51, %s467_s21 }
  0xa5   : > { %v361_v1 = vpop.permute.xlu1 %360 }
  0xf6   : > { %v231_v55 = vpop.f32.mrf.mxu0 }
  0xf7   : > { %v248_v57 = vadd.f32 %v247_v53, %v231_v55 }
  0xfb   : > { %v350_v62 = vpop.permute.xlu2 %349 }
  0xfe   : > { %v233_v56 = vpop.f32.mrf.mxu0 }
 0x113   : > { %v272_v58 = vpop.f32.mrf.mxu2  ;;  %v298_v59 = vpop.f32.mrf.mxu3 }
 0x114   : > { %v276_v60 = vadd.f32 %v272_v58, %v248_v57  ;;  %v352_v61 = vpop.permute.xlu0 %351 }
 0x115   : > { %v354_v0 = vsel %vm283_vm3, %v350_v62, %v352_v61 }
 0x116   : > { %v302_v63 = vadd.f32 %v298_v59, %v276_v60 }
 0x118   : > { %v356_v2 = vadd.f32 %v354_v0, %v302_v63 }
 0x11a   : > { %v363_v3 = vadd.f32 %v361_v1, %v356_v2 }
 0x11b   : > { %v274_v4 = vpop.f32.mrf.mxu2  ;;  %v300_v5 = vpop.f32.mrf.mxu3 }
 0x11c   : > { %364 = vst [vmem:[%s195_s13] sm:$0xff] %v363_v3 }
 0x11d PF: > { %s14_s15 = sadd.s32 1, %s462_s15  }
 0x11e   : > { %p11_p4 = scmp.ge.s32.totalorder %s14_s15, 4  }
 0x120   :  { %13 = sbr.rel (!%p11_p4) target bundleno = 1 (0x1), region = 69 }

</bundles_post_ra>
